<compile_context>
chip_gen: v6e
topology: v6e:2x2x1
jax: 0.10.0
libtpu: 0.0.40
codegen_flags: <defaults>
</compile_context>

<pallas_src>
import functools

import jax
import jax.numpy as jnp
from jax import lax
from jax.experimental import pallas as pl
from jax.experimental.pallas import tpu as pltpu

LANES = 128
SUBLANES = 8
EPSILON = 1e-08


def _focal_loss_kernel(pred_ref, true_ref, out_ref, *,
                       valid_rows, block_rows, tiles_per_group, epsilon):
    g = pl.program_id(0)   # parallel axis (TC split on v7x)
    i = pl.program_id(1)   # reduction axis (arbitrary)

    # The (1, 8, 128) output block is resident across the reduction axis:
    # zero it on the first step of each group.
    @pl.when(i == 0)
    def _():
        out_ref[...] = jnp.zeros_like(out_ref)

    # Cast in-kernel (keeps HBM traffic at the input's native width).
    p = pred_ref[...].astype(jnp.float32)
    t = true_ref[...].astype(jnp.float32)
    one_m_p = 1.0 - p
    term = one_m_p * one_m_p * t * jnp.log(p + jnp.float32(epsilon))

    # Mask rows beyond the real data (partial tail blocks and clamped
    # out-of-range blocks). In-slab pad elements already contribute 0 (t == 0).
    start_row = (g * tiles_per_group + i) * block_rows
    row_idx = start_row + lax.broadcasted_iota(jnp.int32, (block_rows, LANES), 0)
    term = jnp.where(row_idx < valid_rows, term, 0.0)

    # Fold (block_rows, 128) -> (8, 128): layout-preserving reshape + VPU adds.
    partial = term.reshape(block_rows // SUBLANES, SUBLANES, LANES).sum(axis=0)
    out_ref[...] += partial.reshape(1, SUBLANES, LANES)


def focal_loss(y_pred, y_true, *, epsilon=EPSILON, row_tile=2048, num_groups=2):
    """-mean((1 - y_pred)^2 * y_true * log(y_pred + eps)) over all elements."""
    assert y_pred.shape == y_true.shape
    n_total = y_pred.size

    p_flat = y_pred.reshape(-1)
    t_flat = y_true.reshape(-1)

    # Minimal padding (< 1024 elems) only when needed so the slab is
    # [rows, 128] with rows % 8 == 0. Pad values (p=0, t=0) contribute 0.
    chunk = SUBLANES * LANES
    pad = (-n_total) % chunk
    if pad:
        p_flat = jnp.pad(p_flat, (0, pad))
        t_flat = jnp.pad(t_flat, (0, pad))
    rows = (n_total + pad) // LANES

    p2d = p_flat.reshape(rows, LANES)
    t2d = t_flat.reshape(rows, LANES)

    block_rows = min(row_tile, rows)          # both multiples of 8
    tiles_total = pl.cdiv(rows, block_rows)
    groups = min(num_groups, tiles_total)
    tiles_per_group = pl.cdiv(tiles_total, groups)

    def in_map(g, i):
        # Clamp fully out-of-range blocks; they are masked to zero in-kernel.
        return (jnp.minimum(g * tiles_per_group + i, tiles_total - 1), 0)

    kernel = functools.partial(
        _focal_loss_kernel,
        valid_rows=rows,
        block_rows=block_rows,
        tiles_per_group=tiles_per_group,
        epsilon=epsilon,
    )

    partials = pl.pallas_call(
        kernel,
        out_shape=jax.ShapeDtypeStruct((groups, SUBLANES, LANES), jnp.float32),
        grid_spec=pltpu.PrefetchScalarGridSpec(
            num_scalar_prefetch=0,
            grid=(groups, tiles_per_group),
            in_specs=[
                pl.BlockSpec((block_rows, LANES), in_map),
                pl.BlockSpec((block_rows, LANES), in_map),
            ],
            out_specs=pl.BlockSpec((1, SUBLANES, LANES), lambda g, i: (g, 0, 0)),
        ),
        compiler_params=pltpu.CompilerParams(
            dimension_semantics=("parallel", "arbitrary"),
        ),
    )(p2d, t2d)

    # Single tiny cross-lane reduce + scaling, done once outside the kernel.
    return -jnp.sum(partials) / n_total


if __name__ == "__main__":
    key = jax.random.PRNGKey(0)
    k1, k2 = jax.random.split(key)
    # NCHW inputs, same shape for predictions and targets.
    shape = (2, 4, 16, 16)
    # Predictions in (0, 1) like post-sigmoid probabilities; targets in {0, 1}.
    y_pred = jax.nn.sigmoid(jax.random.normal(k1, shape, dtype=jnp.float32))
    y_true = (jax.random.uniform(k2, shape) > 0.5).astype(jnp.float32)

    loss = focal_loss(y_pred, y_true)
    loss = jax.block_until_ready(loss)

    # Pure-JAX reference check.
    ref = -jnp.mean((1.0 - y_pred) ** 2 * y_true * jnp.log(y_pred + EPSILON))
    assert jnp.allclose(loss, ref, rtol=1e-5, atol=1e-6), (loss, ref)

    print("KERNEL_OK")
</pallas_src>

<mosaic_0001>
module attributes {stable_mosaic.version = 11 : i64} {
  func.func @_focal_loss_kernel(%arg0: i32, %arg1: i32, %arg2: memref<16x128xf32, #tpu.memory_space<vmem>>, %arg3: memref<16x128xf32, #tpu.memory_space<vmem>>, %arg4: memref<1x8x128xf32, #tpu.memory_space<vmem>>) attributes {dimension_semantics = [#tpu.dimension_semantics<parallel>, #tpu.dimension_semantics<arbitrary>], iteration_bounds = array<i64: 1, 1>, scalar_prefetch = 0 : i64, scratch_operands = 0 : i64, tpu.core_type = #tpu.core_type<tc>, window_params = [{transform_indices = @transform_0, window_bounds = array<i64: 16, 128>}, {transform_indices = @transform_1, window_bounds = array<i64: 16, 128>}, {transform_indices = @transform_2, window_bounds = array<i64: 1, 8, 128>}]} {
    %c0_i32 = arith.constant 0 : i32
    %0 = arith.cmpi eq, %arg1, %c0_i32 : i32
    %1 = arith.extui %0 : i1 to i32
    %c0_i32_0 = arith.constant 0 : i32
    %2 = arith.cmpi ne, %1, %c0_i32_0 : i32
    scf.if %2 {
      %cst_14 = arith.constant 0.000000e+00 : f32
      %29 = vector.broadcast %cst_14 : f32 to vector<1x8x128xf32>
      %c0_15 = arith.constant 0 : index
      %c0_16 = arith.constant 0 : index
      %c0_17 = arith.constant 0 : index
      %30 = vector.load %arg4[%c0_15, %c0_16, %c0_17] : memref<1x8x128xf32, #tpu.memory_space<vmem>>, vector<1x8x128xf32>
      tpu.vector_store %arg4[%c0_15, %c0_16, %c0_17], %29 {strides = array<i32>} : memref<1x8x128xf32, #tpu.memory_space<vmem>>, vector<1x8x128xf32>,
    } else {
    }
    %c0 = arith.constant 0 : index
    %c0_1 = arith.constant 0 : index
    %3 = vector.load %arg2[%c0, %c0_1] : memref<16x128xf32, #tpu.memory_space<vmem>>, vector<16x128xf32>
    %c0_2 = arith.constant 0 : index
    %c0_3 = arith.constant 0 : index
    %4 = vector.load %arg3[%c0_2, %c0_3] : memref<16x128xf32, #tpu.memory_space<vmem>>, vector<16x128xf32>
    %cst = arith.constant 1.000000e+00 : f32
    %5 = vector.broadcast %cst : f32 to vector<16x128xf32>
    %6 = arith.subf %5, %3 : vector<16x128xf32>
    %7 = arith.mulf %6, %6 : vector<16x128xf32>
    %8 = arith.mulf %7, %4 : vector<16x128xf32>
    %cst_4 = arith.constant 9.99999993E-9 : f32
    %9 = vector.broadcast %cst_4 : f32 to vector<16x128xf32>
    %10 = arith.addf %3, %9 : vector<16x128xf32>
    %11 = math.log %10 : vector<16x128xf32>
    %12 = arith.mulf %8, %11 : vector<16x128xf32>
    %c1_i32 = arith.constant 1 : i32
    %13 = arith.muli %arg0, %c1_i32 : i32
    %14 = arith.addi %13, %arg1 : i32
    %c16_i32 = arith.constant 16 : i32
    %15 = arith.muli %14, %c16_i32 : i32
    %16 = tpu.iota {dimensions = array<i32: 0>} : vector<16x128xi32>
    %17 = vector.broadcast %15 : i32 to vector<16x128xi32>
    %18 = arith.addi %17, %16 : vector<16x128xi32>
    %c16_i32_5 = arith.constant 16 : i32
    %19 = vector.broadcast %c16_i32_5 : i32 to vector<16x128xi32>
    %20 = arith.cmpi slt, %18, %19 : vector<16x128xi32>
    %cst_6 = arith.constant 0.000000e+00 : f32
    %21 = vector.broadcast %cst_6 : f32 to vector<16x128xf32>
    %22 = arith.select %20, %12, %21 : vector<16x128xi1>, vector<16x128xf32>
    %23 = vector.shape_cast %22 : vector<16x128xf32> to vector<2x8x128xf32>
    %cst_7 = arith.constant dense<0.000000e+00> : vector<8x128xf32>
    %24 = vector.multi_reduction <add>, %23, %cst_7 [0] : vector<2x8x128xf32> to vector<8x128xf32>
    %c0_8 = arith.constant 0 : index
    %c0_9 = arith.constant 0 : index
    %c0_10 = arith.constant 0 : index
    %25 = vector.load %arg4[%c0_8, %c0_9, %c0_10] : memref<1x8x128xf32, #tpu.memory_space<vmem>>, vector<1x8x128xf32>
    %26 = vector.shape_cast %24 : vector<8x128xf32> to vector<1x8x128xf32>
    %27 = arith.addf %25, %26 : vector<1x8x128xf32>
    %c0_11 = arith.constant 0 : index
    %c0_12 = arith.constant 0 : index
    %c0_13 = arith.constant 0 : index
    %28 = vector.load %arg4[%c0_11, %c0_12, %c0_13] : memref<1x8x128xf32, #tpu.memory_space<vmem>>, vector<1x8x128xf32>
    tpu.vector_store %arg4[%c0_11, %c0_12, %c0_13], %27 {strides = array<i32>} : memref<1x8x128xf32, #tpu.memory_space<vmem>>, vector<1x8x128xf32>,
    return
  }
  func.func @transform_0(%arg0: i32, %arg1: i32) -> (i32, i32) {
    %c1_i32 = arith.constant 1 : i32
    %0 = arith.muli %arg0, %c1_i32 : i32
    %1 = arith.addi %0, %arg1 : i32
    %c0_i32 = arith.constant 0 : i32
    %2 = arith.minsi %1, %c0_i32 : i32
    %c0_i32_0 = arith.constant 0 : i32
    %c0_i32_1 = arith.constant 0 : i32
    return %2, %c0_i32_0 : i32, i32
  }
  func.func @transform_1(%arg0: i32, %arg1: i32) -> (i32, i32) {
    %c1_i32 = arith.constant 1 : i32
    %0 = arith.muli %arg0, %c1_i32 : i32
    %1 = arith.addi %0, %arg1 : i32
    %c0_i32 = arith.constant 0 : i32
    %2 = arith.minsi %1, %c0_i32 : i32
    %c0_i32_0 = arith.constant 0 : i32
    %c0_i32_1 = arith.constant 0 : i32
    return %2, %c0_i32_0 : i32, i32
  }
  func.func @transform_2(%arg0: i32, %arg1: i32) -> (i32, i32, i32) {
    %c0_i32 = arith.constant 0 : i32
    %c0_i32_0 = arith.constant 0 : i32
    %c0_i32_1 = arith.constant 0 : i32
    return %arg0, %c0_i32, %c0_i32_0 : i32, i32, i32
  }
}

</mosaic_0001>

<bundles_post_ra>
// kernel: tpu_custom_call.1
= control target key start
LH: loop header
LB: loop body
LE: loop exit
PB: predicated region body
PF: predicated region fallthrough
CT: control target
= control target key end

     0   :  { %7 = vsyncpa [#allocation3], 0  ;;  %s224_s0 = inlined_call_operand.hbm [shape: f32[16,128], index: 0, kind: input, shape index: {}]   ;;  %s225_s1 = inlined_call_operand.hbm [shape: f32[16,128], index: 1, kind: input, shape index: {}]   ;;  %s226_s2 = inlined_call_operand.hbm [shape: f32[1,8,128], index: 2, kind: output, shape index: {}]  }
   0x1   :  { %8 = vsyncpa [#allocation6], 0 }
   0x2   :  { %9 = vsyncpa [#allocation4], 0  ;;  %s195_s9 = smov [#allocation2]  }
   0x3   :  { %s21_s10 = sshll.u32 %s195_s9, 4  ;;  %s22_s10 = int_to_ptr.vmem [resolvable:$true] %s21_s10 }
   0x4   :  { %s137_s11 = scalar_lea.vmem %s22_s10, 256  ;;  %p142_p1 = scmp.lt.s32.totalorder %s22_s10, %s22_s10 }
   0x5   :  { %p138_p0 = scmp.ne.s32.totalorder %s22_s10, %s137_s11  ;;  %p143_p2 = scmp.lt.s32.totalorder %s137_s11, %s137_s11 }
   0x7   :  { %p144_p3 = por %p143_p2, %p142_p1 }
   0x9   :  { %p145_p4 = pnand %p144_p3, %p138_p0 }
   0xb   :  { %148 = shalt.err (!%p145_p4)
}
   0xc   :  { %s196_s12 = smov 128   ;;  %s197_s13 = smov 8  }
   0xd   :  { %27 = dma.hbm_to_vmem [thread:$0]  %s224_s0, 256, %s22_s10, [#allocation3], %s196_s12, %s196_s12, %s197_s13  }
   0xe   :  { %s198_s16 = smov [#allocation5]  }
   0xf   :  { %s39_s17 = sshll.u32 %s198_s16, 4  ;;  %s40_s17 = int_to_ptr.vmem [resolvable:$true] %s39_s17 }
  0x10   :  { %s157_s18 = scalar_lea.vmem %s40_s17, 256  ;;  %p162_p6 = scmp.lt.s32.totalorder %s40_s17, %s40_s17 }
  0x11   :  { %p158_p5 = scmp.ne.s32.totalorder %s40_s17, %s157_s18  ;;  %p163_p7 = scmp.lt.s32.totalorder %s157_s18, %s157_s18 }
  0x13   :  { %p164_p8 = por %p163_p7, %p162_p6 }
  0x15   :  { %p165_p9 = pnand %p164_p8, %p158_p5 }
  0x17   :  { %168 = shalt.err (!%p165_p9)
}
  0x18   :  { %45 = dma.hbm_to_vmem [thread:$0]  %s225_s1, 256, %s40_s17, [#allocation6], %s196_s12, %s196_s12, %s197_s13  }
  0x19   :  { %189 = dma.done.wait [#allocation3], 256  }
  0x1a   :  { %190 = vsyncadd [#allocation3], 4294967040 }
  0x1b   :  { %191 = dma.done.wait [#allocation6], 256  }
  0x1c   :  { %192 = vsyncadd [#allocation6], 4294967040  ;;  %v65_v0 = vld [vmem:[#allocation2] sm:$0xff]  ;;  %v66_v1 = vld [vmem:[#allocation2 + $0x8] sm:$0xff]  ;;  %s199_s0 = smov [#allocation7]  }
  0x1d   :  { %v75_v2 = vadd.f32 1e-08, %v65_v0  ;;  %v76_v3 = vadd.f32 1e-08, %v66_v1  ;;  %v69_v4 = vsub.f32 1.0, %v65_v0  ;;  %v70_v5 = vsub.f32 1.0, %v66_v1 }
  0x1e   :  { %v67_v7 = vld [vmem:[#allocation5] sm:$0xff]  ;;  %v68_v9 = vld [vmem:[#allocation5 + $0x8] sm:$0xff]  ;;  %s105_s1 = sshll.u32 %s199_s0, 4  ;;  %s106_s1 = int_to_ptr.vmem [resolvable:$true] %s105_s1 }
  0x1f   :  { %125 = vlog2.f32 %v75_v2  ;;  %v71_v6 = vmul.f32 %v69_v4, %v69_v4  ;;  %v72_v8 = vmul.f32 %v70_v5, %v70_v5  ;;  %s169_s21 = scalar_lea.vmem %s106_s1, 128  ;;  %p174_p11 = scmp.lt.s32.totalorder %s106_s1, %s106_s1 }
  0x20   :  { %127 = vlog2.f32 %v76_v3  ;;  %p170_p10 = scmp.ne.s32.totalorder %s106_s1, %s169_s21  ;;  %p175_p12 = scmp.lt.s32.totalorder %s169_s21, %s169_s21 }
  0x21   :  { %v73_v10 = vmul.f32 %v71_v6, %v67_v7  ;;  %v74_v12 = vmul.f32 %v72_v8, %v68_v9 }
  0x22   :  { %p176_p13 = por %p175_p12, %p174_p11 }
  0x24   :  { %p177_p0 = pnand %p176_p13, %p170_p10 }
  0x2c   :  { %v126_v11 = vpop.eup %125 }
  0x2d   :  { %v128_v13 = vpop.eup %127  ;;  %v78_v14 = vmul.f32 0.6931472, %v126_v11 }
  0x2e   :  { %v80_v15 = vmul.f32 0.6931472, %v128_v13 }
  0x2f   :  { %v81_v16 = vmul.f32 %v78_v14, %v73_v10 }
  0x30   :  { %v82_v17 = vmul.f32 %v80_v15, %v74_v12 }
  0x32   :  { %v95_v18 = vadd.f32 %v82_v17, %v81_v16 }
  0x34   :  { %98 = vst [vmem:[#allocation7] sm:$0xff] %v95_v18 }
  0x35   :  { %180 = shalt.err (!%p177_p0)
}
  0x36   :  { %108 = dma.vmem_to_hbm [thread:$0]  %s106_s1, 128, %s226_s2, [#allocation4]  }
  0x37   :  { %193 = dma.done.wait [#allocation4], 128  }
  0x38   :  { %194 = vsyncadd [#allocation4], 4294967168 }
  0x39   :  { %112 = vsyncpa [#allocation3], 1 }
  0x3a   :  { %113 = vsyncpa [#allocation6], 1 }
  0x3b   :  { %114 = vsyncpa [#allocation4], 1 }

</bundles_post_ra>
